<compile_context>
chip_gen: v6e
topology: v6e:2x2x1
jax: 0.10.0
libtpu: 0.0.40
codegen_flags: <defaults>
</compile_context>

<pallas_src>
import functools
import math

import jax
import jax.numpy as jnp
from jax.experimental import pallas as pl
from jax.experimental.pallas import tpu as pltpu


def _mhsa_kernel(q_ref, kT_ref, v_ref, wq_ref, wkT_ref, wv_ref, wo_ref, o_ref,
                 kT_sc, vh_sc, *, head: int, head_dim: int):
    """One grid step = (batch element b, query tile qi).

    q_ref  : (tq, E)    bf16  query tile (pre-cast wrapper-side)
    kT_ref : (E, S)     bf16  keys, pre-transposed wrapper-side
    v_ref  : (S, E)     bf16
    wq_ref : (H, E, Dh) bf16  head-major, 1/sqrt(Dh) folded in
    wkT_ref: (E, E)     bf16  wk^T (rows ordered (h, d))
    wv_ref : (H, E, Dh) bf16  head-major
    wo_ref : (H, Dh, E) bf16  head-major
    o_ref  : (tq, E)    f32
    kT_sc  : (H, Dh, S) bf16  scratch — K^T per head, reused across q tiles
    vh_sc  : (H, S, Dh) bf16  scratch — V per head, reused across q tiles
    """
    f32 = jnp.float32
    cdt = jnp.bfloat16

    # --- K/V projections: once per batch element (they don't depend on the q tile).
    # Recomputing them per tile (previous version) wasted 2*S*E*E MACs per extra tile.
    @pl.when(pl.program_id(1) == 0)
    def _project_kv():
        # All-head K^T in ONE full-width MXU matmul: (E, E) @ (E, S) -> (E, S).
        # Rows are ordered (h, d), so the per-head split below is a sublane-aligned
        # static slice (whole 8-row groups) — no lane movement, no transpose.
        kT = jnp.dot(wkT_ref[...], kT_ref[...], preferred_element_type=f32)
        xv = v_ref[...]
        for h in range(head):
            kT_sc[h] = kT[h * head_dim:(h + 1) * head_dim, :].astype(cdt)
            # V head-major (H, S, Dh) via per-head matmuls (amortized over all q
            # tiles) so the PV matmul below stays in canonical batched form.
            vh_sc[h] = jnp.dot(xv, wv_ref[h], preferred_element_type=f32).astype(cdt)

    # --- Q projection for this tile: per-head (tq, E) @ (E, Dh).
    # The head split happens on the matmul outputs (each already a (tq, Dh) array),
    # not via lane slices of a (tq, E) tensor. Scale is folded into wq.
    xq = q_ref[...]
    qh = jnp.stack(
        [jnp.dot(xq, wq_ref[h], preferred_element_type=f32) for h in range(head)],
        axis=0).astype(cdt)                                    # (H, tq, Dh)

    # --- Scores: canonical batched matmul (batch leading, lhs contracts its last
    # dim, rhs its second-to-last). K is already (H, Dh, S), so no vxpose is needed
    # and S sits on the lanes of the result.
    s = jnp.einsum('hqd,hds->hqs', qh, kT_sc[...],
                   preferred_element_type=f32)                 # (H, tq, S) f32

    # Softmax math in f32 (v5e has no bf16 VPU/EUP; bf16 temporaries only add casts).
    m = jnp.max(s, axis=-1, keepdims=True)
    p = jnp.exp(s - m)                                         # unnormalized probs
    l = jnp.sum(p, axis=-1, keepdims=True)                     # (H, tq, 1)

    # --- PV: canonical batched matmul. p is cast to bf16 for MXU throughput; keep
    # it f32 (and use an exact reciprocal) if this ever feeds training.
    ctx = jnp.einsum('hqs,hsd->hqd', p.astype(cdt), vh_sc[...],
                     preferred_element_type=f32)               # (H, tq, Dh) f32
    # Normalize the small context instead of the (H, tq, S) prob matrix; the
    # approximate reciprocal runs on the EUP slot.
    ctx = ctx * pl.reciprocal(l, approx=True)

    # --- Output projection with head-major wo: canonical batched matmul, then a
    # cheap VPU reduction over the head axis. No lane-slice concat.
    out = jnp.einsum('hqd,hde->hqe', ctx.astype(cdt), wo_ref[...],
                     preferred_element_type=f32)               # (H, tq, E) f32
    o_ref[...] = jnp.sum(out, axis=0).astype(o_ref.dtype)


def _vmem_limit_bytes(S, E, head, q_tile):
    """Scoped-VMEM request sized from the actual working set (the default scoped
    limit is only 16 MiB on v5e / 32 MiB on v6e & v7x, which full-sequence K/V
    plus the f32 score tensor hits long before physical VMEM)."""
    head_dim = E // head
    bf16, f32 = 2, 4
    blocks = 2 * (q_tile * E * bf16         # q tile (double-buffered)
                  + E * S * bf16            # k^T
                  + S * E * bf16            # v
                  + q_tile * E * f32)       # out
    weights = 2 * 4 * E * E * bf16          # wq_h, wk^T, wv_h, wo_h
    scratch = 2 * head * head_dim * S * bf16
    temps = (2 * head * q_tile * S * f32                 # scores + exp
             + head * q_tile * S * bf16                  # probs cast for PV
             + head * q_tile * (head_dim + E) * f32)     # ctx + per-head out
    est = blocks + weights + scratch + temps
    return int(min(96 * 2**20, max(2 * est, 16 * 2**20)))


def multi_head_self_attention(q, k, v, wq, wk, wv, wo, *, head: int, q_tile=None):
    """q, k, v: [B, S, E] f32; wq/wk/wv/wo: [E, E] input-major (y = x @ W)."""
    B, S, E = q.shape
    assert E % head == 0
    head_dim = E // head

    if q_tile is None:
        # Toy default: whole sequence per step. For real shapes pick 256-512
        # (128 on v5e) so next-tile DMA overlaps compute and per-step overhead
        # (~0.35 us) amortizes; keep E a multiple of 128 for lane-dense stores.
        q_tile = S
    assert S % q_tile == 0
    assert q_tile == S or q_tile % 8 == 0

    bf16 = jnp.bfloat16
    scale = 1.0 / math.sqrt(float(head_dim))

    # Head-major weights (built once in HBM), bf16, with the attention scale folded
    # into wq so no in-kernel (tq, E) multiply is needed.
    wq_h = (wq * scale).reshape(E, head, head_dim).transpose(1, 0, 2).astype(bf16)
    wv_h = wv.reshape(E, head, head_dim).transpose(1, 0, 2).astype(bf16)
    wkT = wk.T.astype(bf16)                            # (E, E), rows ordered (h, d)
    wo_h = wo.reshape(head, head_dim, E).astype(bf16)  # (H, Dh, E)

    # Activations pre-cast to bf16 (halves HBM->VMEM traffic and double-buffered
    # VMEM). k is also pre-transposed to (B, E, S) so the in-kernel K^T projection
    # is a single canonical matmul with no transposes.
    q_b = q.astype(bf16)
    kT_b = jnp.transpose(k, (0, 2, 1)).astype(bf16)
    v_b = v.astype(bf16)

    kernel = functools.partial(_mhsa_kernel, head=head, head_dim=head_dim)

    grid = (B, S // q_tile)

    q_spec = pl.BlockSpec((None, q_tile, E), lambda b, qi: (b, qi, 0))
    kT_spec = pl.BlockSpec((None, E, S), lambda b, qi: (b, 0, 0))   # fetched once per b
    v_spec = pl.BlockSpec((None, S, E), lambda b, qi: (b, 0, 0))    # fetched once per b
    wq_spec = pl.BlockSpec((head, E, head_dim), lambda b, qi: (0, 0, 0))
    wkT_spec = pl.BlockSpec((E, E), lambda b, qi: (0, 0))
    wv_spec = pl.BlockSpec((head, E, head_dim), lambda b, qi: (0, 0, 0))
    wo_spec = pl.BlockSpec((head, head_dim, E), lambda b, qi: (0, 0, 0))
    out_spec = pl.BlockSpec((None, q_tile, E), lambda b, qi: (b, qi, 0))

    # TODO(synk): for long S on v7x (64 MiB VMEM, 32 MiB scoped default) add a kv
    # grid axis with flash-style online softmax — the (H, tq, S) f32 score tensor
    # plus full-S K/V scratch is the VMEM limiter; fp8 weights are a further 2x on
    # weight DMA there.
    # TODO(synk): mask / dropout from the module are not implemented (defaults None).
    # TODO(synk): when q is k is v (true self-attention), pass the activation once
    # and fuse Wq|Wk|Wv into one (E, 3E) projection to cut activation DMA by 2/3.
    return pl.pallas_call(
        kernel,
        out_shape=jax.ShapeDtypeStruct((B, S, E), q.dtype),
        grid_spec=pltpu.PrefetchScalarGridSpec(
            num_scalar_prefetch=0,
            grid=grid,
            in_specs=[q_spec, kT_spec, v_spec, wq_spec, wkT_spec, wv_spec, wo_spec],
            out_specs=out_spec,
            scratch_shapes=[
                pltpu.VMEM((head, head_dim, S), bf16),   # K^T per head
                pltpu.VMEM((head, S, head_dim), bf16),   # V per head
            ]),
        compiler_params=pltpu.CompilerParams(
            # b is megacore-parallel; qi must stay "arbitrary" (sequential, starting
            # at qi=0 per batch element) because the K/V scratch is reused across tiles.
            dimension_semantics=("parallel", "arbitrary"),
            vmem_limit_bytes=_vmem_limit_bytes(S, E, head, q_tile)),
        cost_estimate=pl.CostEstimate(
            flops=8 * B * S * E * E + 4 * B * S * S * E,
            transcendentals=B * head * S * S,
            bytes_accessed=3 * B * S * E * 2 + B * S * E * 4 + 4 * E * E * 2),
    )(q_b, kT_b, v_b, wq_h, wkT, wv_h, wo_h)


def _reference(q, k, v, wq, wk, wv, wo, *, head: int):
    """Pure-JAX (f32) mirror of the PyTorch forward, for correctness checking."""
    B, S, E = q.shape
    Dh = E // head
    Q = q @ wq
    K = k @ wk
    V = v @ wv

    def split(x):  # (B, S, E) -> (B, H, S, Dh)
        return x.reshape(B, S, head, Dh).transpose(0, 2, 1, 3)

    qs, ks, vs = split(Q), split(K), split(V)
    scores = jnp.einsum('bhse,bhle->bhsl', qs, ks) / math.sqrt(float(Dh))
    weights = jax.nn.softmax(scores, axis=-1)
    ctx = jnp.einsum('bhsl,bhld->bhsd', weights, vs)
    ctx = ctx.transpose(0, 2, 1, 3).reshape(B, S, E)
    return ctx @ wo


if __name__ == "__main__":
    B, S, E, HEAD = 2, 8, 32, 4

    key = jax.random.PRNGKey(0)
    kq, kk, kv, k1, k2, k3, k4 = jax.random.split(key, 7)

    q = jax.random.normal(kq, (B, S, E), dtype=jnp.float32)
    k = jax.random.normal(kk, (B, S, E), dtype=jnp.float32)
    v = jax.random.normal(kv, (B, S, E), dtype=jnp.float32)

    # Deterministic synthetic parameters (nn.Linear(E, E, bias=False) x4),
    # stored input-major so the kernel computes x @ W.
    scale = 1.0 / math.sqrt(E)
    wq = jax.random.uniform(k1, (E, E), jnp.float32, -scale, scale)
    wk = jax.random.uniform(k2, (E, E), jnp.float32, -scale, scale)
    wv = jax.random.uniform(k3, (E, E), jnp.float32, -scale, scale)
    wo = jax.random.uniform(k4, (E, E), jnp.float32, -scale, scale)

    out = multi_head_self_attention(q, k, v, wq, wk, wv, wo, head=HEAD)
    out = jax.block_until_ready(out)

    ref = _reference(q, k, v, wq, wk, wv, wo, head=HEAD)
    assert out.shape == (B, S, E)
    # Tolerance loosened vs. pure-f32 because matmul inputs are bf16 and the
    # softmax denominator uses the approximate EUP reciprocal.
    assert jnp.allclose(out, ref, atol=5e-2, rtol=5e-2), (
        "mismatch vs reference; max abs err = "
        f"{float(jnp.max(jnp.abs(out - ref)))}")

    print("KERNEL_OK")
</pallas_src>

<mosaic_0001>
module attributes {stable_mosaic.version = 11 : i64} {
  func.func @_mhsa_kernel(%arg0: i32, %arg1: i32, %arg2: memref<1x8x32xbf16, #tpu.memory_space<vmem>>, %arg3: memref<1x32x8xbf16, #tpu.memory_space<vmem>>, %arg4: memref<1x8x32xbf16, #tpu.memory_space<vmem>>, %arg5: memref<4x32x8xbf16, #tpu.memory_space<vmem>>, %arg6: memref<32x32xbf16, #tpu.memory_space<vmem>>, %arg7: memref<4x32x8xbf16, #tpu.memory_space<vmem>>, %arg8: memref<4x8x32xbf16, #tpu.memory_space<vmem>>, %arg9: memref<1x8x32xf32, #tpu.memory_space<vmem>>, %arg10: memref<4x8x8xbf16, #tpu.memory_space<vmem>>, %arg11: memref<4x8x8xbf16, #tpu.memory_space<vmem>>) attributes {dimension_semantics = [#tpu.dimension_semantics<parallel>, #tpu.dimension_semantics<arbitrary>], iteration_bounds = array<i64: 2, 1>, scalar_prefetch = 0 : i64, scratch_operands = 2 : i64, tpu.core_type = #tpu.core_type<tc>, window_params = [{transform_indices = @transform_0, window_bounds = array<i64: 1, 8, 32>}, {transform_indices = @transform_1, window_bounds = array<i64: 1, 32, 8>}, {transform_indices = @transform_2, window_bounds = array<i64: 1, 8, 32>}, {pipeline_mode = #tpu.pipeline_mode<synchronous>, transform_indices = @transform_3, window_bounds = array<i64: 4, 32, 8>}, {pipeline_mode = #tpu.pipeline_mode<synchronous>, transform_indices = @transform_4, window_bounds = array<i64: 32, 32>}, {pipeline_mode = #tpu.pipeline_mode<synchronous>, transform_indices = @transform_5, window_bounds = array<i64: 4, 32, 8>}, {pipeline_mode = #tpu.pipeline_mode<synchronous>, transform_indices = @transform_6, window_bounds = array<i64: 4, 8, 32>}, {transform_indices = @transform_7, window_bounds = array<i64: 1, 8, 32>}]} {
    %c0_i32 = arith.constant 0 : i32
    %0 = arith.cmpi eq, %arg1, %c0_i32 : i32
    %1 = arith.extui %0 : i1 to i32
    %c0_i32_0 = arith.constant 0 : i32
    %2 = arith.cmpi ne, %1, %c0_i32_0 : i32
    scf.if %2 {
      %c0_33 = arith.constant 0 : index
      %c0_34 = arith.constant 0 : index
      %45 = vector.load %arg6[%c0_33, %c0_34] : memref<32x32xbf16, #tpu.memory_space<vmem>>, vector<32x32xbf16>
      %c0_35 = arith.constant 0 : index
      %c0_36 = arith.constant 0 : index
      %c0_37 = arith.constant 0 : index
      %46 = vector.load %arg3[%c0_35, %c0_36, %c0_37] : memref<1x32x8xbf16, #tpu.memory_space<vmem>>, vector<1x32x8xbf16>
      %47 = vector.shape_cast %46 : vector<1x32x8xbf16> to vector<32x8xbf16>
      %cst_38 = arith.constant dense<0.000000e+00> : vector<32x8xf32>
      %48 = tpu.matmul %45, %47, %cst_38 {dimension_numbers = #tpu.dot_dimension_numbers<[1], [0], [0], [1], [0, 0, 1, 1], [], []>} : vector<32x32xbf16>, vector<32x8xbf16>, vector<32x8xf32> -> vector<32x8xf32>
      %c0_39 = arith.constant 0 : index
      %c0_40 = arith.constant 0 : index
      %c0_41 = arith.constant 0 : index
      %49 = vector.load %arg4[%c0_39, %c0_40, %c0_41] : memref<1x8x32xbf16, #tpu.memory_space<vmem>>, vector<1x8x32xbf16>
      %50 = vector.shape_cast %49 : vector<1x8x32xbf16> to vector<8x32xbf16>
      %51 = vector.extract_strided_slice %48 {offsets = [0, 0], sizes = [8, 8], strides = [1, 1]} : vector<32x8xf32> to vector<8x8xf32>
      %52 = arith.truncf %51 : vector<8x8xf32> to vector<8x8xbf16>
      %c0_42 = arith.constant 0 : index
      %c0_43 = arith.constant 0 : index
      %c0_44 = arith.constant 0 : index
      %53 = vector.load %arg10[%c0_42, %c0_43, %c0_44] : memref<4x8x8xbf16, #tpu.memory_space<vmem>>, vector<1x8x8xbf16>
      %54 = vector.shape_cast %53 : vector<1x8x8xbf16> to vector<8x8xbf16>
      %55 = vector.shape_cast %52 : vector<8x8xbf16> to vector<1x8x8xbf16>
      tpu.vector_store %arg10[%c0_42, %c0_43, %c0_44], %55 {strides = array<i32>} : memref<4x8x8xbf16, #tpu.memory_space<vmem>>, vector<1x8x8xbf16>,
      %c0_45 = arith.constant 0 : index
      %c0_46 = arith.constant 0 : index
      %c0_47 = arith.constant 0 : index
      %56 = vector.load %arg7[%c0_45, %c0_46, %c0_47] : memref<4x32x8xbf16, #tpu.memory_space<vmem>>, vector<1x32x8xbf16>
      %57 = vector.shape_cast %56 : vector<1x32x8xbf16> to vector<32x8xbf16>
      %cst_48 = arith.constant dense<0.000000e+00> : vector<8x8xf32>
      %58 = tpu.matmul %50, %57, %cst_48 {dimension_numbers = #tpu.dot_dimension_numbers<[1], [0], [0], [1], [0, 0, 1, 1], [], []>} : vector<8x32xbf16>, vector<32x8xbf16>, vector<8x8xf32> -> vector<8x8xf32>
      %59 = arith.truncf %58 : vector<8x8xf32> to vector<8x8xbf16>
      %c0_49 = arith.constant 0 : index
      %c0_50 = arith.constant 0 : index
      %c0_51 = arith.constant 0 : index
      %60 = vector.load %arg11[%c0_49, %c0_50, %c0_51] : memref<4x8x8xbf16, #tpu.memory_space<vmem>>, vector<1x8x8xbf16>
      %61 = vector.shape_cast %60 : vector<1x8x8xbf16> to vector<8x8xbf16>
      %62 = vector.shape_cast %59 : vector<8x8xbf16> to vector<1x8x8xbf16>
      tpu.vector_store %arg11[%c0_49, %c0_50, %c0_51], %62 {strides = array<i32>} : memref<4x8x8xbf16, #tpu.memory_space<vmem>>, vector<1x8x8xbf16>,
      %63 = vector.extract_strided_slice %48 {offsets = [8, 0], sizes = [8, 8], strides = [1, 1]} : vector<32x8xf32> to vector<8x8xf32>
      %64 = arith.truncf %63 : vector<8x8xf32> to vector<8x8xbf16>
      %c1_52 = arith.constant 1 : index
      %c0_53 = arith.constant 0 : index
      %c0_54 = arith.constant 0 : index
      %65 = vector.load %arg10[%c1_52, %c0_53, %c0_54] : memref<4x8x8xbf16, #tpu.memory_space<vmem>>, vector<1x8x8xbf16>
      %66 = vector.shape_cast %65 : vector<1x8x8xbf16> to vector<8x8xbf16>
      %67 = vector.shape_cast %64 : vector<8x8xbf16> to vector<1x8x8xbf16>
      tpu.vector_store %arg10[%c1_52, %c0_53, %c0_54], %67 {strides = array<i32>} : memref<4x8x8xbf16, #tpu.memory_space<vmem>>, vector<1x8x8xbf16>,
      %c1_55 = arith.constant 1 : index
      %c0_56 = arith.constant 0 : index
      %c0_57 = arith.constant 0 : index
      %68 = vector.load %arg7[%c1_55, %c0_56, %c0_57] : memref<4x32x8xbf16, #tpu.memory_space<vmem>>, vector<1x32x8xbf16>
      %69 = vector.shape_cast %68 : vector<1x32x8xbf16> to vector<32x8xbf16>
      %cst_58 = arith.constant dense<0.000000e+00> : vector<8x8xf32>
      %70 = tpu.matmul %50, %69, %cst_58 {dimension_numbers = #tpu.dot_dimension_numbers<[1], [0], [0], [1], [0, 0, 1, 1], [], []>} : vector<8x32xbf16>, vector<32x8xbf16>, vector<8x8xf32> -> vector<8x8xf32>
      %71 = arith.truncf %70 : vector<8x8xf32> to vector<8x8xbf16>
      %c1_59 = arith.constant 1 : index
      %c0_60 = arith.constant 0 : index
      %c0_61 = arith.constant 0 : index
      %72 = vector.load %arg11[%c1_59, %c0_60, %c0_61] : memref<4x8x8xbf16, #tpu.memory_space<vmem>>, vector<1x8x8xbf16>
      %73 = vector.shape_cast %72 : vector<1x8x8xbf16> to vector<8x8xbf16>
      %74 = vector.shape_cast %71 : vector<8x8xbf16> to vector<1x8x8xbf16>
      tpu.vector_store %arg11[%c1_59, %c0_60, %c0_61], %74 {strides = array<i32>} : memref<4x8x8xbf16, #tpu.memory_space<vmem>>, vector<1x8x8xbf16>,
      %75 = vector.extract_strided_slice %48 {offsets = [16, 0], sizes = [8, 8], strides = [1, 1]} : vector<32x8xf32> to vector<8x8xf32>
      %76 = arith.truncf %75 : vector<8x8xf32> to vector<8x8xbf16>
      %c2_62 = arith.constant 2 : index
      %c0_63 = arith.constant 0 : index
      %c0_64 = arith.constant 0 : index
      %77 = vector.load %arg10[%c2_62, %c0_63, %c0_64] : memref<4x8x8xbf16, #tpu.memory_space<vmem>>, vector<1x8x8xbf16>
      %78 = vector.shape_cast %77 : vector<1x8x8xbf16> to vector<8x8xbf16>
      %79 = vector.shape_cast %76 : vector<8x8xbf16> to vector<1x8x8xbf16>
      tpu.vector_store %arg10[%c2_62, %c0_63, %c0_64], %79 {strides = array<i32>} : memref<4x8x8xbf16, #tpu.memory_space<vmem>>, vector<1x8x8xbf16>,
      %c2_65 = arith.constant 2 : index
      %c0_66 = arith.constant 0 : index
      %c0_67 = arith.constant 0 : index
      %80 = vector.load %arg7[%c2_65, %c0_66, %c0_67] : memref<4x32x8xbf16, #tpu.memory_space<vmem>>, vector<1x32x8xbf16>
      %81 = vector.shape_cast %80 : vector<1x32x8xbf16> to vector<32x8xbf16>
      %cst_68 = arith.constant dense<0.000000e+00> : vector<8x8xf32>
      %82 = tpu.matmul %50, %81, %cst_68 {dimension_numbers = #tpu.dot_dimension_numbers<[1], [0], [0], [1], [0, 0, 1, 1], [], []>} : vector<8x32xbf16>, vector<32x8xbf16>, vector<8x8xf32> -> vector<8x8xf32>
      %83 = arith.truncf %82 : vector<8x8xf32> to vector<8x8xbf16>
      %c2_69 = arith.constant 2 : index
      %c0_70 = arith.constant 0 : index
      %c0_71 = arith.constant 0 : index
      %84 = vector.load %arg11[%c2_69, %c0_70, %c0_71] : memref<4x8x8xbf16, #tpu.memory_space<vmem>>, vector<1x8x8xbf16>
      %85 = vector.shape_cast %84 : vector<1x8x8xbf16> to vector<8x8xbf16>
      %86 = vector.shape_cast %83 : vector<8x8xbf16> to vector<1x8x8xbf16>
      tpu.vector_store %arg11[%c2_69, %c0_70, %c0_71], %86 {strides = array<i32>} : memref<4x8x8xbf16, #tpu.memory_space<vmem>>, vector<1x8x8xbf16>,
      %87 = vector.extract_strided_slice %48 {offsets = [24, 0], sizes = [8, 8], strides = [1, 1]} : vector<32x8xf32> to vector<8x8xf32>
      %88 = arith.truncf %87 : vector<8x8xf32> to vector<8x8xbf16>
      %c3_72 = arith.constant 3 : index
      %c0_73 = arith.constant 0 : index
      %c0_74 = arith.constant 0 : index
      %89 = vector.load %arg10[%c3_72, %c0_73, %c0_74] : memref<4x8x8xbf16, #tpu.memory_space<vmem>>, vector<1x8x8xbf16>
      %90 = vector.shape_cast %89 : vector<1x8x8xbf16> to vector<8x8xbf16>
      %91 = vector.shape_cast %88 : vector<8x8xbf16> to vector<1x8x8xbf16>
      tpu.vector_store %arg10[%c3_72, %c0_73, %c0_74], %91 {strides = array<i32>} : memref<4x8x8xbf16, #tpu.memory_space<vmem>>, vector<1x8x8xbf16>,
      %c3_75 = arith.constant 3 : index
      %c0_76 = arith.constant 0 : index
      %c0_77 = arith.constant 0 : index
      %92 = vector.load %arg7[%c3_75, %c0_76, %c0_77] : memref<4x32x8xbf16, #tpu.memory_space<vmem>>, vector<1x32x8xbf16>
      %93 = vector.shape_cast %92 : vector<1x32x8xbf16> to vector<32x8xbf16>
      %cst_78 = arith.constant dense<0.000000e+00> : vector<8x8xf32>
      %94 = tpu.matmul %50, %93, %cst_78 {dimension_numbers = #tpu.dot_dimension_numbers<[1], [0], [0], [1], [0, 0, 1, 1], [], []>} : vector<8x32xbf16>, vector<32x8xbf16>, vector<8x8xf32> -> vector<8x8xf32>
      %95 = arith.truncf %94 : vector<8x8xf32> to vector<8x8xbf16>
      %c3_79 = arith.constant 3 : index
      %c0_80 = arith.constant 0 : index
      %c0_81 = arith.constant 0 : index
      %96 = vector.load %arg11[%c3_79, %c0_80, %c0_81] : memref<4x8x8xbf16, #tpu.memory_space<vmem>>, vector<1x8x8xbf16>
      %97 = vector.shape_cast %96 : vector<1x8x8xbf16> to vector<8x8xbf16>
      %98 = vector.shape_cast %95 : vector<8x8xbf16> to vector<1x8x8xbf16>
      tpu.vector_store %arg11[%c3_79, %c0_80, %c0_81], %98 {strides = array<i32>} : memref<4x8x8xbf16, #tpu.memory_space<vmem>>, vector<1x8x8xbf16>,
    } else {
    }
    %c0 = arith.constant 0 : index
    %c0_1 = arith.constant 0 : index
    %c0_2 = arith.constant 0 : index
    %3 = vector.load %arg2[%c0, %c0_1, %c0_2] : memref<1x8x32xbf16, #tpu.memory_space<vmem>>, vector<1x8x32xbf16>
    %4 = vector.shape_cast %3 : vector<1x8x32xbf16> to vector<8x32xbf16>
    %c0_3 = arith.constant 0 : index
    %c0_4 = arith.constant 0 : index
    %c0_5 = arith.constant 0 : index
    %5 = vector.load %arg5[%c0_3, %c0_4, %c0_5] : memref<4x32x8xbf16, #tpu.memory_space<vmem>>, vector<1x32x8xbf16>
    %6 = vector.shape_cast %5 : vector<1x32x8xbf16> to vector<32x8xbf16>
    %cst = arith.constant dense<0.000000e+00> : vector<8x8xf32>
    %7 = tpu.matmul %4, %6, %cst {dimension_numbers = #tpu.dot_dimension_numbers<[1], [0], [0], [1], [0, 0, 1, 1], [], []>} : vector<8x32xbf16>, vector<32x8xbf16>, vector<8x8xf32> -> vector<8x8xf32>
    %c1 = arith.constant 1 : index
    %c0_6 = arith.constant 0 : index
    %c0_7 = arith.constant 0 : index
    %8 = vector.load %arg5[%c1, %c0_6, %c0_7] : memref<4x32x8xbf16, #tpu.memory_space<vmem>>, vector<1x32x8xbf16>
    %9 = vector.shape_cast %8 : vector<1x32x8xbf16> to vector<32x8xbf16>
    %cst_8 = arith.constant dense<0.000000e+00> : vector<8x8xf32>
    %10 = tpu.matmul %4, %9, %cst_8 {dimension_numbers = #tpu.dot_dimension_numbers<[1], [0], [0], [1], [0, 0, 1, 1], [], []>} : vector<8x32xbf16>, vector<32x8xbf16>, vector<8x8xf32> -> vector<8x8xf32>
    %c2 = arith.constant 2 : index
    %c0_9 = arith.constant 0 : index
    %c0_10 = arith.constant 0 : index
    %11 = vector.load %arg5[%c2, %c0_9, %c0_10] : memref<4x32x8xbf16, #tpu.memory_space<vmem>>, vector<1x32x8xbf16>
    %12 = vector.shape_cast %11 : vector<1x32x8xbf16> to vector<32x8xbf16>
    %cst_11 = arith.constant dense<0.000000e+00> : vector<8x8xf32>
    %13 = tpu.matmul %4, %12, %cst_11 {dimension_numbers = #tpu.dot_dimension_numbers<[1], [0], [0], [1], [0, 0, 1, 1], [], []>} : vector<8x32xbf16>, vector<32x8xbf16>, vector<8x8xf32> -> vector<8x8xf32>
    %c3 = arith.constant 3 : index
    %c0_12 = arith.constant 0 : index
    %c0_13 = arith.constant 0 : index
    %14 = vector.load %arg5[%c3, %c0_12, %c0_13] : memref<4x32x8xbf16, #tpu.memory_space<vmem>>, vector<1x32x8xbf16>
    %15 = vector.shape_cast %14 : vector<1x32x8xbf16> to vector<32x8xbf16>
    %cst_14 = arith.constant dense<0.000000e+00> : vector<8x8xf32>
    %16 = tpu.matmul %4, %15, %cst_14 {dimension_numbers = #tpu.dot_dimension_numbers<[1], [0], [0], [1], [0, 0, 1, 1], [], []>} : vector<8x32xbf16>, vector<32x8xbf16>, vector<8x8xf32> -> vector<8x8xf32>
    %17 = vector.shape_cast %7 : vector<8x8xf32> to vector<1x8x8xf32>
    %18 = vector.shape_cast %10 : vector<8x8xf32> to vector<1x8x8xf32>
    %19 = vector.shape_cast %13 : vector<8x8xf32> to vector<1x8x8xf32>
    %20 = vector.shape_cast %16 : vector<8x8xf32> to vector<1x8x8xf32>
    %21 = tpu.concatenate %17, %18, %19, %20 in 0 : vector<1x8x8xf32>, vector<1x8x8xf32>, vector<1x8x8xf32>, vector<1x8x8xf32> -> vector<4x8x8xf32>
    %22 = arith.truncf %21 : vector<4x8x8xf32> to vector<4x8x8xbf16>
    %c0_15 = arith.constant 0 : index
    %c0_16 = arith.constant 0 : index
    %c0_17 = arith.constant 0 : index
    %23 = vector.load %arg10[%c0_15, %c0_16, %c0_17] : memref<4x8x8xbf16, #tpu.memory_space<vmem>>, vector<4x8x8xbf16>
    "tpu.trace_start"() <{level = 10 : i32, message = "hqd,hds->hqs"}> : () -> ()
    %cst_18 = arith.constant dense<0.000000e+00> : vector<4x8x8xf32>
    %24 = tpu.matmul %22, %23, %cst_18 {dimension_numbers = #tpu.dot_dimension_numbers<[2], [1], [1], [2], [0, 0, 0, 1, 1, 2], [0], [0]>} : vector<4x8x8xbf16>, vector<4x8x8xbf16>, vector<4x8x8xf32> -> vector<4x8x8xf32>
    "tpu.trace_stop"() : () -> ()
    %cst_19 = arith.constant dense<0xFF800000> : vector<4x8xf32>
    %25 = vector.multi_reduction <maximumf>, %24, %cst_19 [2] : vector<4x8x8xf32> to vector<4x8xf32>
    %26 = vector.shape_cast %25 : vector<4x8xf32> to vector<4x8x1xf32>
    %27 = vector.broadcast %26 : vector<4x8x1xf32> to vector<4x8x8xf32>
    %28 = arith.subf %24, %27 : vector<4x8x8xf32>
    %29 = math.exp %28 : vector<4x8x8xf32>
    %cst_20 = arith.constant dense<0.000000e+00> : vector<4x8xf32>
    %30 = vector.multi_reduction <add>, %29, %cst_20 [2] : vector<4x8x8xf32> to vector<4x8xf32>
    %31 = vector.shape_cast %30 : vector<4x8xf32> to vector<4x8x1xf32>
    %32 = arith.truncf %29 : vector<4x8x8xf32> to vector<4x8x8xbf16>
    %c0_21 = arith.constant 0 : index
    %c0_22 = arith.constant 0 : index
    %c0_23 = arith.constant 0 : index
    %33 = vector.load %arg11[%c0_21, %c0_22, %c0_23] : memref<4x8x8xbf16, #tpu.memory_space<vmem>>, vector<4x8x8xbf16>
    "tpu.trace_start"() <{level = 10 : i32, message = "hqs,hsd->hqd"}> : () -> ()
    %cst_24 = arith.constant dense<0.000000e+00> : vector<4x8x8xf32>
    %34 = tpu.matmul %32, %33, %cst_24 {dimension_numbers = #tpu.dot_dimension_numbers<[2], [1], [1], [2], [0, 0, 0, 1, 1, 2], [0], [0]>} : vector<4x8x8xbf16>, vector<4x8x8xbf16>, vector<4x8x8xf32> -> vector<4x8x8xf32>
    "tpu.trace_stop"() : () -> ()
    %35 = tpu.reciprocal %31 {approx = true} : vector<4x8x1xf32> -> vector<4x8x1xf32>
    %36 = vector.broadcast %35 : vector<4x8x1xf32> to vector<4x8x8xf32>
    %37 = arith.mulf %34, %36 : vector<4x8x8xf32>
    %38 = arith.truncf %37 : vector<4x8x8xf32> to vector<4x8x8xbf16>
    %c0_25 = arith.constant 0 : index
    %c0_26 = arith.constant 0 : index
    %c0_27 = arith.constant 0 : index
    %39 = vector.load %arg8[%c0_25, %c0_26, %c0_27] : memref<4x8x32xbf16, #tpu.memory_space<vmem>>, vector<4x8x32xbf16>
    "tpu.trace_start"() <{level = 10 : i32, message = "hqd,hde->hqe"}> : () -> ()
    %cst_28 = arith.constant dense<0.000000e+00> : vector<4x8x32xf32>
    %40 = tpu.matmul %38, %39, %cst_28 {dimension_numbers = #tpu.dot_dimension_numbers<[2], [1], [1], [2], [0, 0, 0, 1, 1, 2], [0], [0]>} : vector<4x8x8xbf16>, vector<4x8x32xbf16>, vector<4x8x32xf32> -> vector<4x8x32xf32>
    "tpu.trace_stop"() : () -> ()
    %cst_29 = arith.constant dense<0.000000e+00> : vector<8x32xf32>
    %41 = vector.multi_reduction <add>, %40, %cst_29 [0] : vector<4x8x32xf32> to vector<8x32xf32>
    %c0_30 = arith.constant 0 : index
    %c0_31 = arith.constant 0 : index
    %c0_32 = arith.constant 0 : index
    %42 = vector.load %arg9[%c0_30, %c0_31, %c0_32] : memref<1x8x32xf32, #tpu.memory_space<vmem>>, vector<1x8x32xf32>
    %43 = vector.shape_cast %42 : vector<1x8x32xf32> to vector<8x32xf32>
    %44 = vector.shape_cast %41 : vector<8x32xf32> to vector<1x8x32xf32>
    tpu.vector_store %arg9[%c0_30, %c0_31, %c0_32], %44 {strides = array<i32>} : memref<1x8x32xf32, #tpu.memory_space<vmem>>, vector<1x8x32xf32>,
    return
  }
  func.func @transform_0(%arg0: i32, %arg1: i32) -> (i32, i32, i32) {
    %c0_i32 = arith.constant 0 : i32
    %c0_i32_0 = arith.constant 0 : i32
    return %arg0, %arg1, %c0_i32 : i32, i32, i32
  }
  func.func @transform_1(%arg0: i32, %arg1: i32) -> (i32, i32, i32) {
    %c0_i32 = arith.constant 0 : i32
    %c0_i32_0 = arith.constant 0 : i32
    %c0_i32_1 = arith.constant 0 : i32
    return %arg0, %c0_i32, %c0_i32_0 : i32, i32, i32
  }
  func.func @transform_2(%arg0: i32, %arg1: i32) -> (i32, i32, i32) {
    %c0_i32 = arith.constant 0 : i32
    %c0_i32_0 = arith.constant 0 : i32
    %c0_i32_1 = arith.constant 0 : i32
    return %arg0, %c0_i32, %c0_i32_0 : i32, i32, i32
  }
  func.func @transform_3(%arg0: i32, %arg1: i32) -> (i32, i32, i32) {
    %c0_i32 = arith.constant 0 : i32
    %c0_i32_0 = arith.constant 0 : i32
    %c0_i32_1 = arith.constant 0 : i32
    %c0_i32_2 = arith.constant 0 : i32
    return %c0_i32, %c0_i32_0, %c0_i32_1 : i32, i32, i32
  }
  func.func @transform_4(%arg0: i32, %arg1: i32) -> (i32, i32) {
    %c0_i32 = arith.constant 0 : i32
    %c0_i32_0 = arith.constant 0 : i32
    %c0_i32_1 = arith.constant 0 : i32
    return %c0_i32, %c0_i32_0 : i32, i32
  }
  func.func @transform_5(%arg0: i32, %arg1: i32) -> (i32, i32, i32) {
    %c0_i32 = arith.constant 0 : i32
    %c0_i32_0 = arith.constant 0 : i32
    %c0_i32_1 = arith.constant 0 : i32
    %c0_i32_2 = arith.constant 0 : i32
    return %c0_i32, %c0_i32_0, %c0_i32_1 : i32, i32, i32
  }
  func.func @transform_6(%arg0: i32, %arg1: i32) -> (i32, i32, i32) {
    %c0_i32 = arith.constant 0 : i32
    %c0_i32_0 = arith.constant 0 : i32
    %c0_i32_1 = arith.constant 0 : i32
    %c0_i32_2 = arith.constant 0 : i32
    return %c0_i32, %c0_i32_0, %c0_i32_1 : i32, i32, i32
  }
  func.func @transform_7(%arg0: i32, %arg1: i32) -> (i32, i32, i32) {
    %c0_i32 = arith.constant 0 : i32
    %c0_i32_0 = arith.constant 0 : i32
    return %arg0, %arg1, %c0_i32 : i32, i32, i32
  }
}

</mosaic_0001>

<bundles_post_ra>
// kernel: tpu_custom_call.1
= control target key start
LH: loop header
LB: loop body
LE: loop exit
PB: predicated region body
PF: predicated region fallthrough
CT: control target
= control target key end

     0   :  { %12 = vsyncpa [#allocation5], 0  ;;  %s2452_s0 = inlined_call_operand.vmem [shape: bf16[2,8,32], index: 0, kind: input, shape index: {}]   ;;  %s2453_s1 = inlined_call_operand.vmem [shape: bf16[2,32,8], index: 1, kind: input, shape index: {}]   ;;  %s2454_s2 = inlined_call_operand.vmem [shape: bf16[2,8,32], index: 2, kind: input, shape index: {}]   ;;  %s2455_s3 = inlined_call_operand.vmem [shape: bf16[4,32,8], index: 3, kind: input, shape index: {}]   ;;  %s2456_s4 = inlined_call_operand.vmem [shape: bf16[32,32], index: 4, kind: input, shape index: {}]   ;;  %s2457_s5 = inlined_call_operand.vmem [shape: bf16[4,32,8], index: 5, kind: input, shape index: {}]   ;;  %s2458_s6 = inlined_call_operand.vmem [shape: bf16[4,8,32], index: 6, kind: input, shape index: {}]   ;;  %s2459_s7 = inlined_call_operand.hbm [shape: f32[2,8,32], index: 7, kind: output, shape index: {}]  }
   0x1   :  { %14 = vsyncpa [#allocation5 + $0x1], 0  ;;  %s2144_s24 = smov 0   ;;  %s2146_s25 = smov 0  }
   0x2   :  { %s2148_s26 = smov 0   ;;  %s2150_s27 = smov 0  }
   0x3   :  { %s2152_s28 = smov 0   ;;  %s2154_s29 = smov 0  }
   0x4 LB: > { %s1653_s30 = sadd.s32 4294967295, %s2099_s29   ;;  %s1654_s8 = sadd.s32 4294967294, %s2099_s29   ;;  %s2099_s29 = sphi %s2154_s29, %s20_s29   ;;  %s2095_s28 = sphi %s2152_s28, %s2466_s28   ;;  %s2091_s27 = sphi %s2150_s27, %s2465_s27   ;;  %s2087_s26 = sphi %s2148_s26, %s2464_s26   ;;  %s2083_s25 = sphi %s2146_s25, %s2463_s25   ;;  %s2079_s24 = sphi %s2144_s24, %s2462_s24  }
   0x5   : > { %s32_s9 = sadd.s32 1, %s2095_s28  ;;  %s205_s10 = sadd.s32 1, %s2087_s26 }
   0x6   : > { %p34_p0 = scmp.ge.s32.totalorder %s32_s9, 2  ;;  %p215_p1 = scmp.ne.s32.totalorder %s2087_s26, %s2083_s25 }
   0x7   : > { %p216_p2 = scmp.eq.s32.totalorder %s1653_s30, 1  ;;  %p221_p3 = scmp.ne.s32.totalorder %s2083_s25, %s2079_s24 }
   0x8   : > { %s2468_s9 = smov (%p34_p0, %s32_s9), 0  ;;  %p222_p5 = scmp.eq.s32.totalorder %s1654_s8, 1 }
   0x9   : > { %p2184_p4 = por %p216_p2, %p215_p1  ;;  %s200_s12 = ssub.s32 %s2095_s28, %s2468_s9 }
   0xa   : > { %p1657_p6 = scmp.ge.s32.totalorder %s2099_s29, 1  ;;  %p203_p7 = scmp.eq.s32.totalorder %s200_s12, 0 }
   0xb   : > { %p2191_p8 = por %p222_p5, %p221_p3  ;;  %p277_p9 = scmp.lt.s32.totalorder %s2099_s29, 3 }
   0xc   : > { %s2197_s14 = scalar_select %p203_p7, %s2087_s26, %s205_s10  }
   0xd   : > { %p278_p10 = pnand %p1657_p6, %p277_p9 }
   0xe   : > { %p320_p11 = scmp.lt.s32.totalorder (!%p278_p10), %s2091_s27, 1  ;;  %s1730_s8 = sshll.u32 (!%p278_p10), %s2091_s27, 7 }
   0xf   : > { %281 = sbr.rel (%p278_p10) target bundleno = 1019 (0x3fb), region = 48 }
  0x14   : > { %v1987_v0 = vld [vmem:[%s2457_s5 + $0x8] sm:$0xff]   ;;  %v2101_v1 = vmov 0.0   ;;  %v1989_v2 = vld [vmem:[%s2457_s5] sm:$0xff]   ;;  %vm371_vm0 = vcmask 261120   ;;  %s2208_s19 = scalar_select %p320_p11, %s2091_s27, 1  ;;  %vm2102_vm1 = vmmov 0  }
  0x15   : > { %1794 = vmatprep.subr.bf16.mxu1 %v2101_v1  ;;  %1798 = vmatprep.mubr.msk.bf16.mxu1 %vm2102_vm1, %v2101_v1  ;;  %v1991_v3 = vld [vmem:[%s2456_s4] sm:$0xff]   ;;  %v1992_v4 = vld [vmem:[%s2457_s5 + $0x28] sm:$0xff]   ;;  %v1994_v10 = vld [vmem:[%s2457_s5 + $0x18] sm:$0xff]   ;;  %vm429_vm2 = vcmask 60416   ;;  %vm925_vm3 = vcmask 1043456   ;;  %vm921_vm4 = vcmask 64512  }
  0x16   : > { %1795 = vmatpush3.bf16.msra.mxu1 %v1987_v0  ;;  %s1733_s22 = sshll.u32 %s2208_s19, 4  ;;  %s1659_s23 = sshll.u32 %s2208_s19, 2  ;;  %1790 = vmatprep.mubr.msk.bf16.mxu0 %vm371_vm0, %v1991_v3  ;;  %v1995_v8 = vld [vmem:[%s2457_s5 + $0x20] sm:$0xff]   ;;  %v1993_v9 = vld [vmem:[%s2456_s4 + $0x8] sm:$0xff]   ;;  %v1996_v12 = vld [vmem:[%s2457_s5 + $0x10] sm:$0xff]  }
  0x17   : > { %1796 = vmatprep.subr.bf16.mxu1 %v2101_v1  ;;  %s331_s15 = scalar_lea.vmem %s2453_s1, %s1733_s22  ;;  %s335_s18 = scalar_lea.vmem %s2454_s2, %s1659_s23  ;;  %v1997_v11 = vld [vmem:[%s2455_s3 + $0x8] sm:$0xff]   ;;  %v1999_v13 = vld [vmem:[%s2455_s3] sm:$0xff]   ;;  %v1998_v14 = vld [vmem:[%s2457_s5 + $0x38] sm:$0xff]  }
  0x18   : > { %v1988_v5 = vld [vmem:[%s331_s15 + $0x8] sm:$0xff]   ;;  %v1990_v6 = vld [vmem:[%s331_s15] sm:$0xff]   ;;  %s326_s30 = scalar_lea.vmem %s2452_s0, %s1659_s23  ;;  %v2000_v17 = vld [vmem:[%s2457_s5 + $0x30] sm:$0xff]   ;;  %s317_s22 = sand.u32 1, %s2083_s25  }
  0x19   : > { %1786 = vmatprep.subr.bf16.mxu0 %v1988_v5  ;;  %v427_v7 = vld [vmem:[%s335_s18] sm:$0xf]  ;;  %v2001_v16 = vld [vmem:[%s2455_s3 + $0x28] sm:$0xff]   ;;  %v2002_v19 = vld [vmem:[%s2455_s3 + $0x18] sm:$0xff]   ;;  %s2411_s23 = scalar_lea.hbm %s2459_s7, %s1730_s8  ;;  %s1544_s16 = scalar_lea.sflag [#allocation5], %s317_s22 }
  0x1a   : > { %1797 = vmatpush3.bf16.msra.mxu1 %v1989_v2  ;;  %1787 = vmatpush3.bf16.msra.mxu0 %v1988_v5  ;;  %v681_v15 = vld [vmem:[%s326_s30] sm:$0xf]  ;;  %v2004_v20 = vld [vmem:[%s2455_s3 + $0x10] sm:$0xff]   ;;  %v2005_v21 = vld [vmem:[%s2455_s3 + $0x38] sm:$0xff]   ;;  %s1658_s30 = sshll.u32 %s317_s22, 3  ;;  %s2103_s27 = smov [#allocation4]  }
  0x1b   : > { %1810 = vmatprep.subr.bf16.mxu1 %v2101_v1  ;;  %1788 = vmatprep.subr.bf16.mxu0 %v1990_v6  ;;  %v2003_v18 = vld [vmem:[%s2455_s3 + $0x20] sm:$0xff]   ;;  %v2006_v22 = vld [vmem:[%s2455_s3 + $0x30] sm:$0xff]   ;;  %s319_s10 = scalar_lea.vmem [#allocation4], %s1658_s30  ;;  %s2027_s18 = sshll.u32 %s2103_s27, 4  ;;  %s2028_s18 = int_to_ptr.vmem [resolvable:$false] %s2027_s18 }
  0x1c   : > { %s1558_s12 = sshll.u32 %s319_s10, 4  ;;  %s2029_s20 = scalar_lea.vmem %s2028_s18, 256  ;;  %s1559_s12 = int_to_ptr.vmem [resolvable:$true] %s1558_s12 }
  0x1d   : > { %1799 = vmatmul.mubr.msk.bf16.vlgmr.msra.gmra.mxu1 %vm371_vm0, %v427_v7  ;;  %s2023_s17 = scalar_lea.vmem %s1559_s12, 128  ;;  %p2030_p1 = scmp.lt.s32.totalorder %s1559_s12, %s2028_s18 }
  0x1e   : > { %1811 = vmatpush3.bf16.msra.mxu1 %v1992_v4  ;;  %1814 = vmatprep.mubr.msk.bf16.mxu1 %vm2102_vm1, %v2101_v1  ;;  %p2024_p12 = scmp.ne.s32.totalorder %s1559_s12, %s2023_s17  ;;  %p2031_p2 = scmp.lt.s32.totalorder %s2029_s20, %s2023_s17 }
  0x1f   : > { %1812 = vmatprep.subr.bf16.mxu1 %v2101_v1  ;;  %1789 = vmatpush3.bf16.msra.mxu0 %v1990_v6 }
  0x20   : > { %1802 = vmatprep.subr.bf16.mxu0 %v2101_v1  ;;  %p2025_p13 = pnand %p2024_p12, %p2184_p4  ;;  %p2032_p3 = por %p2031_p2, %p2030_p1 }
  0x22   : > { %1813 = vmatpush3.bf16.msra.mxu1 %v1995_v8  ;;  %1791 = vmatmul.mubr.msk.bf16.vlgmr.msra.gmra.mxu0 %vm371_vm0, %v1993_v9  ;;  %p2026_p0 = pneg %p2025_p13 }
  0x23   : > { %1826 = vmatprep.subr.bf16.mxu1 %v2101_v1  ;;  %1803 = vmatpush3.bf16.msra.mxu0 %v1994_v10 }
  0x24   : > { %1804 = vmatprep.subr.bf16.mxu0 %v2101_v1  ;;  %1806 = vmatprep.mubr.msk.bf16.mxu0 %vm2102_vm1, %v2101_v1  ;;  %p2033_p5 = pnand %p2032_p3, %p2026_p0 }
  0x25   : > { %1815 = vmatmul.mubr.msk.bf16.vlgmr.msra.gmra.mxu1 %vm371_vm0, %v427_v7 }
  0x26   : > { %1827 = vmatpush3.bf16.msra.mxu1 %v1997_v11  ;;  %1830 = vmatprep.mubr.msk.bf16.mxu1 %vm2102_vm1, %v2101_v1 }
  0x27   : > { %1828 = vmatprep.subr.bf16.mxu1 %v2101_v1  ;;  %1805 = vmatpush3.bf16.msra.mxu0 %v1996_v12 }
  0x28   : > { %1818 = vmatprep.subr.bf16.mxu0 %v2101_v1 }
  0x2a   : > { %1829 = vmatpush3.bf16.msra.mxu1 %v1999_v13  ;;  %1807 = vmatmul.mubr.msk.bf16.vlgmr.msra.gmra.mxu0 %vm371_vm0, %v427_v7 }
  0x2b   : > { %1842 = vmatprep.subr.bf16.mxu1 %v2101_v1  ;;  %1819 = vmatpush3.bf16.msra.mxu0 %v1998_v14 }
  0x2c   : > { %1822 = vmatprep.mubr.msk.bf16.mxu0 %vm2102_vm1, %v2101_v1  ;;  %1820 = vmatprep.subr.bf16.mxu0 %v2101_v1 }
  0x2d   : > { %1831 = vmatmul.mubr.msk.bf16.vlgmr.msra.gmra.mxu1 %vm371_vm0, %v681_v15 }
  0x2e   : > { %1843 = vmatpush3.bf16.msra.mxu1 %v2001_v16  ;;  %1846 = vmatprep.mubr.msk.bf16.mxu1 %vm2102_vm1, %v2101_v1 }
  0x2f   : > { %1844 = vmatprep.subr.bf16.mxu1 %v2101_v1  ;;  %1821 = vmatpush3.bf16.msra.mxu0 %v2000_v17 }
  0x30   : > { %1834 = vmatprep.subr.bf16.mxu0 %v2101_v1 }
  0x32   : > { %1845 = vmatpush3.bf16.msra.mxu1 %v2003_v18  ;;  %1823 = vmatmul.mubr.msk.bf16.vlgmr.msra.gmra.mxu0 %vm371_vm0, %v427_v7 }
  0x33   : > { %1858 = vmatprep.subr.bf16.mxu1 %v2101_v1  ;;  %1835 = vmatpush3.bf16.msra.mxu0 %v2002_v19 }
  0x34   : > { %1838 = vmatprep.mubr.msk.bf16.mxu0 %vm2102_vm1, %v2101_v1  ;;  %1836 = vmatprep.subr.bf16.mxu0 %v2101_v1 }
  0x35   : > { %1847 = vmatmul.mubr.msk.bf16.vlgmr.msra.gmra.mxu1 %vm371_vm0, %v681_v15 }
  0x36   : > { %1860 = vmatprep.mubr.msk.bf16.mxu1 %vm2102_vm1, %v2101_v1 }
  0x37   : > { %1837 = vmatpush3.bf16.msra.mxu0 %v2004_v20 }
  0x38   : > { %1850 = vmatprep.subr.bf16.mxu0 %v2101_v1 }
  0x3a   : > { %1839 = vmatmul.mubr.msk.bf16.vlgmr.msra.gmra.mxu0 %vm371_vm0, %v681_v15 }
  0x3b   : > { %1851 = vmatpush3.bf16.msra.mxu0 %v2005_v21  ;;  %1854 = vmatprep.mubr.msk.bf16.mxu0 %vm2102_vm1, %v2101_v1 }
  0x3c   : > { %1852 = vmatprep.subr.bf16.mxu0 %v2101_v1 }
  0x3f   : > { %1853 = vmatpush3.bf16.msra.mxu0 %v2006_v22 }
  0x40   : > { %1864 = vmatprep.subr.bf16.mxu0 %v2101_v1 }
  0x42   : > { %1855 = vmatmul.mubr.msk.bf16.vlgmr.msra.gmra.mxu0 %vm371_vm0, %v681_v15 }
  0x43   : > { %1866 = vmatprep.mubr.msk.bf16.mxu0 %vm2102_vm1, %v2101_v1 }
  0xdd   : > { %v484_v23 = vpop.f32.mrf.mxu1 }
  0xde   : > { %v490_v24 = vpack.c.bf16 %v484_v23, %v484_v23 }
  0xdf   : > { %v1800_v25 = vpop.f32.mrf.mxu1 }
  0xe0   : > { %491 = vst.msk [vmem:[#allocation3] sm:$0xf] %vm429_vm2, %v490_v24 }
  0xe1   : > { %v487_v26 = vpop.f32.mrf.mxu1 }
  0xe2   : > { %v1792_v28 = vpop.f32.mrf.mxu0 }
  0xe3   : > { %v1801_v27 = vpop.f32.mrf.mxu1  ;;  %v555_v29 = vpack.c.bf16 %v1792_v28, %v1792_v28 }
  0xe4   : > { %v412_v31 = vpop.f32.mrf.mxu0 }
  0xe5   : > { %v609_v30 = vpop.f32.mrf.mxu1  ;;  %557 = vst.msk [vmem:[#allocation2 + $0x8] sm:$0xf] %vm429_vm2, %v555_v29  ;;  %v428_v33 = vpack.c.bf16 %v412_v31, %v412_v31 }
  0xe6   : > { %v615_v32 = vpack.c.bf16 %v609_v30, %v609_v30  ;;  %v1793_v35 = vpop.f32.mrf.mxu0 }
  0xe7   : > { %v1816_v34 = vpop.f32.mrf.mxu1  ;;  %430 = vst.msk [vmem:[#allocation2] sm:$0xf] %vm429_vm2, %v428_v33  ;;  %v618_v36 = vpack.c.bf16 %v1793_v35, %v1793_v35  ;;  %v1147_v2 = vld [vmem:[#allocation3] sm:$0xf] }
  0xe8   : > { %617 = vst.msk [vmem:[#allocation3 + $0x8] sm:$0xf] %vm429_vm2, %v615_v32  ;;  %v415_v38 = vpop.f32.mrf.mxu0  ;;  %v1155_v8 = vsel %vm925_vm3, %v1147_v2, 0 }
  0xe9   : > { %v612_v37 = vpop.f32.mrf.mxu1  ;;  %620 = vst.msk [vmem:[#allocation2 + $0xc] sm:$0xf] %vm429_vm2, %v618_v36  ;;  %v492_v39 = vpack.c.bf16 %v415_v38, %v415_v38 }
  0xea   : > { %v546_v41 = vpop.f32.mrf.mxu0 }
  0xeb   : > { %v1817_v40 = vpop.f32.mrf.mxu1  ;;  %494 = vst.msk [vmem:[#allocation2 + $0x4] sm:$0xf] %vm429_vm2, %v492_v39  ;;  %v552_v42 = vpack.c.bf16 %v546_v41, %v546_v41 }
  0xec   : > { %v1808_v43 = vpop.f32.mrf.mxu0  ;;  %v919_v52 = vld [vmem:[#allocation2 + $0x8] sm:$0xf] }
  0xed   : > { %v736_v44 = vpop.f32.mrf.mxu1  ;;  %554 = vst.msk [vmem:[#allocation3 + $0x4] sm:$0xf] %vm429_vm2, %v552_v42  ;;  %v1019_v58 = vsel %vm925_vm3, %v919_v52, 0 }
  0xee   : > { %v549_v45 = vpop.f32.mrf.mxu0  ;;  %v917_v46 = vld [vmem:[#allocation2] sm:$0xf]  ;;  %v913_v48 = vpack.c.bf16 %v736_v44, %v736_v44 }
  0xef   : > { %v1832_v47 = vpop.f32.mrf.mxu1  ;;  %v927_v49 = vsel %vm925_vm3, %v917_v46, 0 }
  0xf0   : > { %v1809_v50 = vpop.f32.mrf.mxu0  ;;  %1859 = vmatpush3.bf16.msra.mxu1 %v927_v49  ;;  %v920_v5 = vld [vmem:[#allocation2 + $0xc] sm:$0xf] }
  0xf1   : > { %v739_v51 = vpop.f32.mrf.mxu1  ;;  %1870 = vmatprep.subr.bf16.mxu1 %v2101_v1  ;;  %v1065_v10 = vsel %vm925_vm3, %v920_v5, 0  ;;  %v1347_v5 = vld [vmem:[%s2458_s6] sm:$0xf] }
  0xf2   : > { %v672_v53 = vpop.f32.mrf.mxu0  ;;  %v918_v54 = vld [vmem:[#allocation2 + $0x4] sm:$0xf]  ;;  %v1149_v51 = vld [vmem:[#allocation3 + $0x8] sm:$0xf] }
  0xf3   : > { %v1833_v55 = vpop.f32.mrf.mxu1  ;;  %v678_v56 = vpack.c.bf16 %v672_v53, %v672_v53  ;;  %1861 = vmatmul.mubr.msk.bf16.vlgmr.msra.gmra.mxu1 %vm921_vm4, %v913_v48  ;;  %v973_v57 = vsel %vm925_vm3, %v918_v54, 0 }
  0xf4   : > { %v1824_v59 = vpop.f32.mrf.mxu0  ;;  %1865 = vmatpush3.bf16.msra.mxu0 %v973_v57  ;;  %1871 = vmatpush3.bf16.msra.mxu1 %v1019_v58  ;;  %v1148_v14 = vld [vmem:[#allocation3 + $0x4] sm:$0xf] }
  0xf5   : > { %v850_v60 = vpop.f32.mrf.mxu1  ;;  %680 = vst.msk [vmem:[#allocation3 + $0xc] sm:$0xf] %vm429_vm2, %v678_v56  ;;  %1872 = vmatprep.mubr.msk.bf16.mxu1 %vm2102_vm1, %v2101_v1  ;;  %1882 = vmatprep.subr.bf16.mxu1 %v2101_v1  ;;  %v1201_v17 = vsel %vm925_vm3, %v1148_v14, 0  ;;  %v1247_v56 = vsel %vm925_vm3, %v1149_v51, 0  ;;  %v1349_v14 = vld [vmem:[%s2458_s6 + $0x8] sm:$0xf] }
  0xf6   : > { %v675_v61 = vpop.f32.mrf.mxu0  ;;  %1876 = vmatprep.subr.bf16.mxu0 %v2101_v1  ;;  %v915_v63 = vpack.c.bf16 %v850_v60, %v850_v60 }
  0xf7   : > { %v1848_v62 = vpop.f32.mrf.mxu1 }
  0xf8   : > { %v1825_v0 = vpop.f32.mrf.mxu0 }
  0xf9   : > { %v853_v3 = vpop.f32.mrf.mxu1 }
  0xfa   : > { %v793_v4 = vpop.f32.mrf.mxu0 }
  0xfb   : > { %v1849_v6 = vpop.f32.mrf.mxu1  ;;  %v914_v7 = vpack.c.bf16 %v793_v4, %v793_v4  ;;  %1873 = vmatmul.mubr.msk.bf16.vlgmr.msra.gmra.mxu1 %vm921_vm4, %v915_v63 }
  0xfc   : > { %1883 = vmatpush3.bf16.msra.mxu1 %v1155_v8  ;;  %v1840_v9 = vpop.f32.mrf.mxu0  ;;  %1884 = vmatprep.mubr.msk.bf16.mxu1 %vm2102_vm1, %v2101_v1  ;;  %v1150_v61 = vld [vmem:[#allocation3 + $0xc] sm:$0xf]  ;;  %v1355_v6 = vsel %vm925_vm3, %v1347_v5, 0 }
  0xfd   : > { %1867 = vmatmul.mubr.msk.bf16.vlgmr.msra.gmra.mxu0 %vm921_vm4, %v914_v7  ;;  %1894 = vmatprep.subr.bf16.mxu1 %v2101_v1  ;;  %v1293_v0 = vsel %vm925_vm3, %v1150_v61, 0  ;;  %v1348_v7 = vld [vmem:[%s2458_s6 + $0x4] sm:$0xf] }
  0xfe   : > { %1877 = vmatpush3.bf16.msra.mxu0 %v1065_v10  ;;  %v796_v11 = vpop.f32.mrf.mxu0  ;;  %1878 = vmatprep.mubr.msk.bf16.mxu0 %vm2102_vm1, %v2101_v1  ;;  %v1401_v8 = vsel %vm925_vm3, %v1348_v7, 0 }
  0xff   : > { %1888 = vmatprep.subr.bf16.mxu0 %v2101_v1 }
 0x100   : > { %v1841_v12 = vpop.f32.mrf.mxu0 }
 0x102   : > { %v907_v13 = vpop.f32.mrf.mxu0 }
 0x103   : > { %v916_v15 = vpack.c.bf16 %v907_v13, %v907_v13 }
 0x104   : > { %v1856_v16 = vpop.f32.mrf.mxu0 }
 0x105   : > { %1879 = vmatmul.mubr.msk.bf16.vlgmr.msra.gmra.mxu0 %vm921_vm4, %v916_v15 }
 0x106   : > { %1889 = vmatpush3.bf16.msra.mxu0 %v1201_v17  ;;  %v910_v18 = vpop.f32.mrf.mxu0  ;;  %1890 = vmatprep.mubr.msk.bf16.mxu0 %vm2102_vm1, %v2101_v1 }
 0x107   : > { %1900 = vmatprep.subr.bf16.mxu0 %v2101_v1 }
 0x108   : > { %v1857_v19 = vpop.f32.mrf.mxu0 }
 0x109   : > { %v1447_v19 = vsel %vm925_vm3, %v1349_v14, 0 }
 0x1b3   : > { %v963_v20 = vpop.f32.mrf.mxu1 }
 0x1b4   : > { %v1107_v21 = vsel %vm921_vm4, %v963_v20, -inf }
 0x1b5   : > { %1108 = vmax.xlane.f32.xlu0 %v1107_v21  ;;  %v1862_v22 = vpop.f32.mrf.mxu1 }
 0x1b7   : > { %v966_v23 = vpop.f32.mrf.mxu1 }
 0x1b9   : > { %v1863_v24 = vpop.f32.mrf.mxu1 }
 0x1bb   : > { %v1055_v25 = vpop.f32.mrf.mxu1 }
 0x1bc   : > { %v1113_v26 = vsel %vm921_vm4, %v1055_v25, -inf }
 0x1bd   : > { %v1009_v27 = vpop.f32.mrf.mxu0  ;;  %1114 = vmax.xlane.f32.xlu1 %v1113_v26  ;;  %v1874_v28 = vpop.f32.mrf.mxu1 }
 0x1be   : > { %v1110_v29 = vsel %vm921_vm4, %v1009_v27, -inf  ;;  %v1350_v28 = vld [vmem:[%s2458_s6 + $0xc] sm:$0xf] }
 0x1bf   : > { %v1868_v30 = vpop.f32.mrf.mxu0  ;;  %1111 = vmax.xlane.f32.xlu0 %v1110_v29  ;;  %v1058_v31 = vpop.f32.mrf.mxu1 }
 0x1c1   : > { %v1012_v32 = vpop.f32.mrf.mxu0  ;;  %v1875_v33 = vpop.f32.mrf.mxu1 }
 0x1c3   : > { %v1869_v34 = vpop.f32.mrf.mxu0 }
 0x1c4   : > { %v1493_v34 = vsel %vm925_vm3, %v1350_v28, 0 }
 0x1c5   : > { %v1101_v35 = vpop.f32.mrf.mxu0 }
 0x1c6   : > { %v1116_v36 = vsel %vm921_vm4, %v1101_v35, -inf }
 0x1c7   : > { %v1880_v37 = vpop.f32.mrf.mxu0  ;;  %1117 = vmax.xlane.f32.xlu1 %v1116_v36 }
 0x1c9   : > { %v1104_v38 = vpop.f32.mrf.mxu0 }
 0x1cb   : > { %v1881_v39 = vpop.f32.mrf.mxu0 }
 0x23e   : > { %v1109_v40 = vpop.xlane.xlu0 %1108 }
 0x23f   : > { %v1119_v41 = vsub.f32 %v963_v20, %v1109_v40 }
 0x241   : > { %v1123_v42 = vmul.f32 1.442695, %v1119_v41 }
 0x243   : > { %2007 = vpow2.f32 %v1123_v42 }
 0x246   : > { %v1115_v43 = vpop.xlane.xlu1 %1114 }
 0x247   : > { %v1121_v44 = vsub.f32 %v1055_v25, %v1115_v43 }
 0x248   : > { %v1112_v45 = vpop.xlane.xlu0 %1111 }
 0x249   : > { %v1127_v46 = vmul.f32 1.442695, %v1121_v44  ;;  %v1120_v47 = vsub.f32 %v1009_v27, %v1112_v45 }
 0x24b   : > { %2009 = vpow2.f32 %v1127_v46  ;;  %v1125_v48 = vmul.f32 1.442695, %v1120_v47 }
 0x24d   : > { %2011 = vpow2.f32 %v1125_v48 }
 0x250   : > { %v2008_v49 = vpop.eup %2007  ;;  %v1118_v50 = vpop.xlane.xlu1 %1117 }
 0x251   : > { %v1122_v52 = vsub.f32 %v1101_v35, %v1118_v50  ;;  %v1131_v53 = vsel %vm921_vm4, %v2008_v49, 0.0  ;;  %v1143_v54 = vpack.c.bf16 %v2008_v49, %v2008_v49 }
 0x252   : > { %1132 = vadd.xlane.f32.xlu0 %v1131_v53 }
 0x253   : > { %v1129_v55 = vmul.f32 1.442695, %v1122_v52  ;;  %1885 = vmatmul.mubr.msk.bf16.vlgmr.msra.gmra.mxu1 %vm921_vm4, %v1143_v54 }
 0x254   : > { %1895 = vmatpush3.bf16.msra.mxu1 %v1247_v56  ;;  %1896 = vmatprep.mubr.msk.bf16.mxu1 %vm2102_vm1, %v2101_v1 }
 0x255   : > { %2013 = vpow2.f32 %v1129_v55  ;;  %1906 = vmatprep.subr.bf16.mxu1 %v2101_v1 }
 0x258   : > { %v2010_v57 = vpop.eup %2009 }
 0x259   : > { %v1137_v58 = vsel %vm921_vm4, %v2010_v57, 0.0  ;;  %v1145_v59 = vpack.c.bf16 %v2010_v57, %v2010_v57 }
 0x25a   : > { %v2012_v60 = vpop.eup %2011  ;;  %1138 = vadd.xlane.f32.xlu0 %v1137_v58 }
 0x25b   : > { %1897 = vmatmul.mubr.msk.bf16.vlgmr.msra.gmra.mxu1 %vm921_vm4, %v1145_v59  ;;  %v1134_v62 = vsel %vm921_vm4, %v2012_v60, 0.0  ;;  %v1144_v63 = vpack.c.bf16 %v2012_v60, %v2012_v60 }
 0x25c   : > { %1135 = vadd.xlane.f32.xlu1 %v1134_v62  ;;  %1908 = vmatprep.mubr.msk.bf16.mxu1 %vm2102_vm1, %v2101_v1 }
 0x25d   : > { %1891 = vmatmul.mubr.msk.bf16.vlgmr.msra.gmra.mxu0 %vm921_vm4, %v1144_v63  ;;  %1907 = vmatpush3.bf16.msra.mxu1 %v1355_v6 }
 0x25e   : > { %1901 = vmatpush3.bf16.msra.mxu0 %v1293_v0  ;;  %1902 = vmatprep.mubr.msk.bf16.mxu0 %vm2102_vm1, %v2101_v1 }
 0x25f   : > { %1912 = vmatprep.subr.bf16.mxu0 %v2101_v1  ;;  %1918 = vmatprep.subr.bf16.mxu1 %v2101_v1 }
 0x262   : > { %v2014_v2 = vpop.eup %2013 }
 0x263   : > { %v1140_v3 = vsel %vm921_vm4, %v2014_v2, 0.0  ;;  %v1146_v4 = vpack.c.bf16 %v2014_v2, %v2014_v2 }
 0x264   : > { %1141 = vadd.xlane.f32.xlu1 %v1140_v3 }
 0x265   : > { %1903 = vmatmul.mubr.msk.bf16.vlgmr.msra.gmra.mxu0 %vm921_vm4, %v1146_v4 }
 0x266   : > { %1914 = vmatprep.mubr.msk.bf16.mxu0 %vm2102_vm1, %v2101_v1  ;;  %1913 = vmatpush3.bf16.msra.mxu0 %v1401_v8 }
 0x267   : > { %1924 = vmatprep.subr.bf16.mxu0 %v2101_v1 }
 0x2db   : > { %v1133_v9 = vpop.xlane.xlu0 %1132 }
 0x2dc   : > { %2015 = vrcp.f32 %v1133_v9 }
 0x2e3   : > { %v1139_v10 = vpop.xlane.xlu0 %1138 }
 0x2e4   : > { %2017 = vrcp.f32 %v1139_v10 }
 0x2e5   : > { %v1136_v11 = vpop.xlane.xlu1 %1135 }
 0x2e6   : > { %2019 = vrcp.f32 %v1136_v11 }
 0x2e9   : > { %v2016_v12 = vpop.eup %2015 }
 0x2ed   : > { %v1142_v16 = vpop.xlane.xlu1 %1141 }
 0x2ee   : > { %2021 = vrcp.f32 %v1142_v16 }
 0x2f1   : > { %v2018_v22 = vpop.eup %2017 }
 0x2f3   : > { %v2020_v25 = vpop.eup %2019 }
 0x2fb   : > { %v2022_v38 = vpop.eup %2021 }
 0x313   : > { %v1191_v13 = vpop.f32.mrf.mxu1 }
 0x314   : > { %v1339_v15 = vmul.f32 %v2016_v12, %v1191_v13 }
 0x315   : > { %v1886_v17 = vpop.f32.mrf.mxu1 }
 0x316   : > { %v1343_v18 = vpack.c.bf16 %v1339_v15, %v1339_v15 }
 0x317   : > { %v1194_v20 = vpop.f32.mrf.mxu1 }
 0x318   : > { %1909 = vmatmul.mubr.msk.bf16.vlgmr.msra.gmra.mxu1 %vm921_vm4, %v1343_v18 }
 0x319   : > { %v1887_v21 = vpop.f32.mrf.mxu1  ;;  %1919 = vmatpush3.bf16.msra.mxu1 %v1447_v19  ;;  %1920 = vmatprep.mubr.msk.bf16.mxu1 %vm2102_vm1, %v2101_v1 }
 0x31b   : > { %v1283_v23 = vpop.f32.mrf.mxu1 }
 0x31c   : > { %v1341_v24 = vmul.f32 %v2018_v22, %v1283_v23 }
 0x31d   : > { %v1237_v26 = vpop.f32.mrf.mxu0  ;;  %v1898_v27 = vpop.f32.mrf.mxu1 }
 0x31e   : > { %v1345_v29 = vpack.c.bf16 %v1341_v24, %v1341_v24  ;;  %v1340_v30 = vmul.f32 %v2020_v25, %v1237_v26 }
 0x31f   : > { %v1892_v31 = vpop.f32.mrf.mxu0  ;;  %v1286_v32 = vpop.f32.mrf.mxu1 }
 0x320   : > { %v1344_v33 = vpack.c.bf16 %v1340_v30, %v1340_v30  ;;  %1921 = vmatmul.mubr.msk.bf16.vlgmr.msra.gmra.mxu1 %vm921_vm4, %v1345_v29 }
 0x321   : > { %v1240_v35 = vpop.f32.mrf.mxu0  ;;  %v1899_v36 = vpop.f32.mrf.mxu1 }
 0x322   : > { %1915 = vmatmul.mubr.msk.bf16.vlgmr.msra.gmra.mxu0 %vm921_vm4, %v1344_v33 }
 0x323   : > { %v1893_v37 = vpop.f32.mrf.mxu0  ;;  %1925 = vmatpush3.bf16.msra.mxu0 %v1493_v34  ;;  %1926 = vmatprep.mubr.msk.bf16.mxu0 %vm2102_vm1, %v2101_v1 }
 0x325   : > { %v1329_v39 = vpop.f32.mrf.mxu0 }
 0x326   : > { %v1342_v40 = vmul.f32 %v2022_v38, %v1329_v39 }
 0x327   : > { %v1904_v41 = vpop.f32.mrf.mxu0 }
 0x328   : > { %v1346_v42 = vpack.c.bf16 %v1342_v40, %v1342_v40 }
 0x329   : > { %v1332_v43 = vpop.f32.mrf.mxu0 }
 0x32a   : > { %1927 = vmatmul.mubr.msk.bf16.vlgmr.msra.gmra.mxu0 %vm921_vm4, %v1346_v42 }
 0x32b   : > { %v1905_v44 = vpop.f32.mrf.mxu0 }
 0x3d8   : > { %v1391_v45 = vpop.f32.mrf.mxu1 }
 0x3d9   : > { %v1535_v54 = vsel %vm371_vm0, %v1391_v45, 0.0 }
 0x3da   : > { %v1910_v46 = vpop.f32.mrf.mxu1 }
 0x3dc   : > { %v1394_v47 = vpop.f32.mrf.mxu1 }
 0x3de   : > { %v1911_v48 = vpop.f32.mrf.mxu1 }
 0x3e0   : > { %v1483_v49 = vpop.f32.mrf.mxu1 }
 0x3e1   : > { %v1538_v59 = vsel %vm371_vm0, %v1483_v49, 0.0 }
 0x3e2   : > { %v1437_v50 = vpop.f32.mrf.mxu0  ;;  %v1922_v51 = vpop.f32.mrf.mxu1 }
 0x3e3   : > { %v1536_v1 = vsel %vm371_vm0, %v1437_v50, 0.0 }
 0x3e4   : > { %v1916_v52 = vpop.f32.mrf.mxu0  ;;  %v1486_v53 = vpop.f32.mrf.mxu1  ;;  %v1537_v55 = vadd.f32 %v1536_v1, %v1535_v54 }
 0x3e6   : > { %v1440_v56 = vpop.f32.mrf.mxu0  ;;  %v1923_v57 = vpop.f32.mrf.mxu1  ;;  %v1539_v61 = vadd.f32 %v1538_v59, %v1537_v55 }
 0x3e8   : > { %v1917_v58 = vpop.f32.mrf.mxu0 }
 0x3ea   : > { %v1529_v60 = vpop.f32.mrf.mxu0 }
 0x3eb   : > { %v1540_v62 = vsel %vm371_vm0, %v1529_v60, 0.0 }
 0x3ec   : > { %v1541_v63 = vadd.f32 %v1540_v62, %v1539_v61  ;;  %v1928_v0 = vpop.f32.mrf.mxu0 }
 0x3ee   : > { %v1532_v2 = vpop.f32.mrf.mxu0  ;;  %1542 = vst.msk [vmem:[%s319_s10] sm:$0xff] %vm371_vm0, %v1541_v63 }
 0x3ef   : > { %2036 = shalt.err (!%p2033_p5)
}
 0x3f0   : > { %s2037_s21 = scalar_lea.hbm %s2411_s23, 128  ;;  %s2041_s8 = scalar_lea.hbm %s2459_s7, 256 }
 0x3f1   : > { %p2038_p6 = scmp.ne.s32.totalorder %s2411_s23, %s2037_s21  ;;  %p2042_p10 = scmp.lt.s32.totalorder %s2411_s23, %s2459_s7 }
 0x3f2   : > { %p2043_p11 = scmp.lt.s32.totalorder %s2041_s8, %s2037_s21 }
 0x3f3   : > { %p2039_p7 = pnand %p2038_p6, %p2184_p4 }
 0x3f4   : > { %p2044_p12 = por %p2043_p11, %p2042_p10 }
 0x3f5   : > { %p2040_p9 = pneg %p2039_p7 }
 0x3f7   : > { %p2045_p13 = pnand %p2044_p12, %p2040_p9 }
 0x3f9   : > { %2048 = shalt.err (!%p2045_p13)
}
 0x3fa   : > { %1930 = dma.vmem_to_hbm [thread:$0]  (%p2184_p4), %s1559_s12, 128, %s2411_s23, %s1544_s16   ;;  %v1929_v3 = vpop.f32.mrf.mxu0 }
 0x3fb PF: > { %p1936_p0 = scmp.ge.s32.totalorder %s2099_s29, 2  ;;  %s1570_s19 = sand.u32 1, %s2079_s24  }
 0x3fc   : > { %s1571_s17 = scalar_lea.sflag [#allocation5], %s1570_s19 }
 0x3fd   : > { %p1933_p1 = pnand %p1936_p0, %p2191_p8 }
 0x3ff   : > { %p1934_p2 = pneg %p1933_p1 }
 0x401   : > { %2074 = dma.done.wait (%p1934_p2), %s1571_s17, 128  }
 0x402   : > { %2076 = vsyncadd (%p1934_p2), %s1571_s17, 4294967168  ;;  %s20_s29 = sadd.s32 1, %s2099_s29   ;;  %s2462_s24 = smov %s2083_s25 }
 0x403   : > { %p17_p3 = scmp.ge.s32.totalorder %s20_s29, 4   ;;  %s2463_s25 = smov %s2087_s26 }
 0x404   : > { %s2464_s26 = smov %s2197_s14  ;;  %s2465_s27 = smov %s2095_s28 }
 0x405   : > { %s2466_s28 = smov %s2468_s9  ;;  %19 = sbr.rel (!%p17_p3) target bundleno = 4 (0x4), region = 105 }
 0x40a   :  { %1576 = vsyncpa [#allocation5], 1 }
 0x40b   :  { %1578 = vsyncpa [#allocation5 + $0x1], 1 }

</bundles_post_ra>
